<compile_context>
chip_gen: v7x
topology: tpu7x:2x2x1
jax: 0.10.0
libtpu: 0.0.40
codegen_flags: <defaults>
</compile_context>

<pallas_src>
import numpy as np
import jax
import jax.numpy as jnp
from jax import lax
from jax.experimental import pallas as pl
from jax.experimental.pallas import tpu as pltpu

M = 2048  # hidden width of the NTK net
INV_SQRT_M = float(1.0 / np.sqrt(M))


def ntk_kernel(x_ref, w1_ref, b1_ref, w2t_ref, b2_ref, o_ref):
    """Fused fc1 -> relu -> fc2 -> bias -> 1/sqrt(M), single grid step."""
    # fc1: (B, D_in) @ (D_in, M) + (1, M), then ReLU.  f32 accumulation on MXU.
    h = jnp.dot(x_ref[...], w1_ref[...], preferred_element_type=jnp.float32)
    h = jnp.maximum(h + b1_ref[...], 0.0)

    # fc2 with lane-dense transposed weights: contract last dims of
    # h (B, M) and W2^T (D_out, M) -> (B, D_out).
    y = lax.dot_general(
        h, w2t_ref[...],
        dimension_numbers=(((1,), (1,)), ((), ())),
        preferred_element_type=jnp.float32,
    )
    o_ref[...] = ((y + b2_ref[...]) * jnp.float32(INV_SQRT_M)).astype(o_ref.dtype)


def ntk_forward(x, w1, b1, w2, b2):
    """x: (B, D_in) f32; w1: (D_in, M); b1: (M,); w2: (M, D_out); b2: (D_out,)."""
    B, D_in = x.shape
    D_out = w2.shape[1]
    assert w1.shape == (D_in, M) and w2.shape[0] == M

    b1_2d = b1.reshape(1, M)
    b2_2d = b2.reshape(1, D_out)
    w2_t = w2.T  # (D_out, M) — lane-dense layout for VMEM / MXU feed

    return pl.pallas_call(
        ntk_kernel,
        out_shape=jax.ShapeDtypeStruct((B, D_out), x.dtype),
        grid=(1,),
        in_specs=[
            pl.BlockSpec((B, D_in), lambda i: (0, 0)),    # x (full)
            pl.BlockSpec((D_in, M), lambda i: (0, 0)),    # W1 (full)
            pl.BlockSpec((1, M), lambda i: (0, 0)),       # b1 (full)
            pl.BlockSpec((D_out, M), lambda i: (0, 0)),   # W2^T (full, lane-dense)
            pl.BlockSpec((1, D_out), lambda i: (0, 0)),   # b2 (full)
        ],
        out_specs=pl.BlockSpec((B, D_out), lambda i: (0, 0)),
        compiler_params=pltpu.CompilerParams(
            dimension_semantics=("arbitrary",),
        ),
    )(x, w1, b1_2d, w2_t, b2_2d)


def init_params(key, input_size, output_size):
    """Deterministic init mimicking nn.Linear's U(-1/sqrt(fan_in), 1/sqrt(fan_in))."""
    k1, k2, k3, k4 = jax.random.split(key, 4)
    lim1 = 1.0 / np.sqrt(input_size)
    lim2 = 1.0 / np.sqrt(M)
    w1 = jax.random.uniform(k1, (input_size, M), jnp.float32, -lim1, lim1)
    b1 = jax.random.uniform(k2, (M,), jnp.float32, -lim1, lim1)
    w2 = jax.random.uniform(k3, (M, output_size), jnp.float32, -lim2, lim2)
    b2 = jax.random.uniform(k4, (output_size,), jnp.float32, -lim2, lim2)
    return w1, b1, w2, b2


if __name__ == "__main__":
    input_size = 32
    output_size = 8
    batch = 8

    key = jax.random.PRNGKey(0)
    kx, kp = jax.random.split(key)
    x = jax.random.normal(kx, (batch, input_size), jnp.float32)
    w1, b1, w2, b2 = init_params(kp, input_size, output_size)

    y = ntk_forward(x, w1, b1, w2, b2)
    y = jax.block_until_ready(y)

    # Pure-JAX reference check of the forward semantics.
    h_ref = jnp.maximum(x @ w1 + b1, 0.0)
    y_ref = (h_ref @ w2 + b2) / np.sqrt(M)
    np.testing.assert_allclose(np.asarray(y), np.asarray(y_ref), rtol=1e-5, atol=1e-5)

    print("KERNEL_OK")
</pallas_src>

<mosaic_0001>
module attributes {stable_mosaic.version = 11 : i64} {
  func.func @ntk_kernel(%arg0: i32, %arg1: memref<8x32xf32, #tpu.memory_space<vmem>>, %arg2: memref<32x2048xf32, #tpu.memory_space<vmem>>, %arg3: memref<1x2048xf32, #tpu.memory_space<vmem>>, %arg4: memref<8x2048xf32, #tpu.memory_space<vmem>>, %arg5: memref<1x8xf32, #tpu.memory_space<vmem>>, %arg6: memref<8x8xf32, #tpu.memory_space<vmem>>) attributes {dimension_semantics = [#tpu.dimension_semantics<arbitrary>], iteration_bounds = array<i64: 1>, scalar_prefetch = 0 : i64, scratch_operands = 0 : i64, tpu.core_type = #tpu.core_type<tc>, window_params = [{pipeline_mode = #tpu.pipeline_mode<synchronous>, transform_indices = @transform_0, window_bounds = array<i64: 8, 32>}, {pipeline_mode = #tpu.pipeline_mode<synchronous>, transform_indices = @transform_1, window_bounds = array<i64: 32, 2048>}, {pipeline_mode = #tpu.pipeline_mode<synchronous>, transform_indices = @transform_2, window_bounds = array<i64: 1, 2048>}, {pipeline_mode = #tpu.pipeline_mode<synchronous>, transform_indices = @transform_3, window_bounds = array<i64: 8, 2048>}, {pipeline_mode = #tpu.pipeline_mode<synchronous>, transform_indices = @transform_4, window_bounds = array<i64: 1, 8>}, {pipeline_mode = #tpu.pipeline_mode<synchronous>, transform_indices = @transform_5, window_bounds = array<i64: 8, 8>}]} {
    %c0 = arith.constant 0 : index
    %c0_0 = arith.constant 0 : index
    %0 = vector.load %arg1[%c0, %c0_0] : memref<8x32xf32, #tpu.memory_space<vmem>>, vector<8x32xf32>
    %c0_1 = arith.constant 0 : index
    %c0_2 = arith.constant 0 : index
    %1 = vector.load %arg2[%c0_1, %c0_2] : memref<32x2048xf32, #tpu.memory_space<vmem>>, vector<32x2048xf32>
    %cst = arith.constant dense<0.000000e+00> : vector<8x2048xf32>
    %2 = tpu.matmul %0, %1, %cst {dimension_numbers = #tpu.dot_dimension_numbers<[1], [0], [0], [1], [0, 0, 1, 1], [], []>} : vector<8x32xf32>, vector<32x2048xf32>, vector<8x2048xf32> -> vector<8x2048xf32>
    %c0_3 = arith.constant 0 : index
    %c0_4 = arith.constant 0 : index
    %3 = vector.load %arg3[%c0_3, %c0_4] : memref<1x2048xf32, #tpu.memory_space<vmem>>, vector<1x2048xf32>
    %4 = vector.broadcast %3 : vector<1x2048xf32> to vector<8x2048xf32>
    %5 = arith.addf %2, %4 : vector<8x2048xf32>
    %cst_5 = arith.constant 0.000000e+00 : f32
    %6 = vector.broadcast %cst_5 : f32 to vector<8x2048xf32>
    %7 = arith.maximumf %5, %6 : vector<8x2048xf32>
    %c0_6 = arith.constant 0 : index
    %c0_7 = arith.constant 0 : index
    %8 = vector.load %arg4[%c0_6, %c0_7] : memref<8x2048xf32, #tpu.memory_space<vmem>>, vector<8x2048xf32>
    %cst_8 = arith.constant dense<0.000000e+00> : vector<8x8xf32>
    %9 = tpu.matmul %7, %8, %cst_8 {dimension_numbers = #tpu.dot_dimension_numbers<[1], [1], [0], [0], [0, 0, 1, 0], [], []>} : vector<8x2048xf32>, vector<8x2048xf32>, vector<8x8xf32> -> vector<8x8xf32>
    %c0_9 = arith.constant 0 : index
    %c0_10 = arith.constant 0 : index
    %10 = vector.load %arg5[%c0_9, %c0_10] : memref<1x8xf32, #tpu.memory_space<vmem>>, vector<1x8xf32>
    %11 = vector.broadcast %10 : vector<1x8xf32> to vector<8x8xf32>
    %12 = arith.addf %9, %11 : vector<8x8xf32>
    %cst_11 = arith.constant 0.0220970865 : f32
    %13 = vector.broadcast %cst_11 : f32 to vector<8x8xf32>
    %14 = arith.mulf %12, %13 : vector<8x8xf32>
    %c0_12 = arith.constant 0 : index
    %c0_13 = arith.constant 0 : index
    %15 = vector.load %arg6[%c0_12, %c0_13] : memref<8x8xf32, #tpu.memory_space<vmem>>, vector<8x8xf32>
    tpu.vector_store %arg6[%c0_12, %c0_13], %14 {strides = array<i32>} : memref<8x8xf32, #tpu.memory_space<vmem>>, vector<8x8xf32>,
    return
  }
  func.func @transform_0(%arg0: i32) -> (i32, i32) {
    %c0_i32 = arith.constant 0 : i32
    %c0_i32_0 = arith.constant 0 : i32
    %c0_i32_1 = arith.constant 0 : i32
    return %c0_i32, %c0_i32_0 : i32, i32
  }
  func.func @transform_1(%arg0: i32) -> (i32, i32) {
    %c0_i32 = arith.constant 0 : i32
    %c0_i32_0 = arith.constant 0 : i32
    %c0_i32_1 = arith.constant 0 : i32
    return %c0_i32, %c0_i32_0 : i32, i32
  }
  func.func @transform_2(%arg0: i32) -> (i32, i32) {
    %c0_i32 = arith.constant 0 : i32
    %c0_i32_0 = arith.constant 0 : i32
    %c0_i32_1 = arith.constant 0 : i32
    return %c0_i32, %c0_i32_0 : i32, i32
  }
  func.func @transform_3(%arg0: i32) -> (i32, i32) {
    %c0_i32 = arith.constant 0 : i32
    %c0_i32_0 = arith.constant 0 : i32
    %c0_i32_1 = arith.constant 0 : i32
    return %c0_i32, %c0_i32_0 : i32, i32
  }
  func.func @transform_4(%arg0: i32) -> (i32, i32) {
    %c0_i32 = arith.constant 0 : i32
    %c0_i32_0 = arith.constant 0 : i32
    %c0_i32_1 = arith.constant 0 : i32
    return %c0_i32, %c0_i32_0 : i32, i32
  }
  func.func @transform_5(%arg0: i32) -> (i32, i32) {
    %c0_i32 = arith.constant 0 : i32
    %c0_i32_0 = arith.constant 0 : i32
    %c0_i32_1 = arith.constant 0 : i32
    return %c0_i32, %c0_i32_0 : i32, i32
  }
}

</mosaic_0001>

<bundles_post_ra>
// kernel: tpu_custom_call.1
= control target key start
LH: loop header
LB: loop body
LE: loop exit
PB: predicated region body
PF: predicated region fallthrough
CT: control target
= control target key end

     0   :  { %10 = vsyncpa [#allocation3], 0  ;;  %s1787_s0 = inlined_call_operand.hbm [shape: f32[8,32], index: 0, kind: input, shape index: {}]   ;;  %s1788_s1 = inlined_call_operand.hbm [shape: f32[32,2048], index: 1, kind: input, shape index: {}]   ;;  %s1789_s2 = inlined_call_operand.hbm [shape: f32[1,2048], index: 2, kind: input, shape index: {}]   ;;  %s1790_s3 = inlined_call_operand.hbm [shape: f32[8,2048], index: 3, kind: input, shape index: {}]   ;;  %s1791_s4 = inlined_call_operand.vmem [shape: f32[1,8], index: 4, kind: input, shape index: {}]   ;;  %s1792_s5 = inlined_call_operand.hbm [shape: f32[8,8], index: 5, kind: output, shape index: {}]  }
   0x1   :  { %11 = vsyncpa [#allocation6], 0 }
   0x2   :  { %12 = vsyncpa [#allocation9], 0 }
   0x3   :  { %13 = vsyncpa [#allocation4], 0  ;;  %s1624_s18 = smov [#allocation5]   ;;  %s1506_s22 = scalar_lea.hbm %s1788_s1, 8192 }
   0x4   :  { %s29_s19 = sshll.u32 %s1624_s18, 4  ;;  %p1507_p0 = scmp.ne.s32.totalorder %s1788_s1, %s1506_s22  ;;  %s30_s19 = int_to_ptr.vmem [resolvable:$true] %s29_s19 }
   0x5   :  { %p1510_p1 = scmp.lt.u32.totalorder %s1506_s22, %s1788_s1 }
   0x7   :  { %p1512_p2 = pnand %p1510_p1, %p1507_p0 }
   0x9   :  { %1515 = shalt.err (!%p1512_p2)
}
   0xa   :  { %s1516_s27 = scalar_lea.vmem %s30_s19, 8192  ;;  %p1521_p4 = scmp.lt.s32.totalorder %s30_s19, %s30_s19 }
   0xb   :  { %p1517_p3 = scmp.ne.s32.totalorder %s30_s19, %s1516_s27  ;;  %p1522_p5 = scmp.lt.s32.totalorder %s1516_s27, %s1516_s27 }
   0xd   :  { %p1523_p6 = por %p1522_p5, %p1521_p4 }
   0xf   :  { %p1524_p7 = pnand %p1523_p6, %p1517_p3 }
  0x11   :  { %1527 = shalt.err (!%p1524_p7)
}
  0x12   :  { %s1625_s28 = smov 2048   ;;  %s1626_s29 = smov 128  }
  0x13   :  { %35 = dma.hbm_to_vmem [thread:$0]  %s1788_s1, 8192, %s30_s19, [#allocation6], %s1625_s28, %s1625_s28, %s1626_s29  }
  0x14   :  { %s1627_s7 = smov [#allocation2]   ;;  %s1628_s9 = smov [#allocation7]  }
  0x15   :  { %s20_s8 = sshll.u32 %s1627_s7, 4  ;;  %s42_s10 = sshll.u32 %s1628_s9, 4  ;;  %s21_s8 = int_to_ptr.vmem [resolvable:$true] %s20_s8  ;;  %s43_s10 = int_to_ptr.vmem [resolvable:$true] %s42_s10 }
  0x16   :  { %s1528_s13 = scalar_lea.hbm %s1787_s0, 128 }
  0x17   :  { %p1529_p8 = scmp.ne.s32.totalorder %s1787_s0, %s1528_s13  ;;  %p1532_p9 = scmp.lt.u32.totalorder %s1528_s13, %s1787_s0 }
  0x19   :  { %p1534_p10 = pnand %p1532_p9, %p1529_p8 }
  0x1b   :  { %1537 = shalt.err (!%p1534_p10)
}
  0x1c   :  { %s1538_s1 = scalar_lea.vmem %s21_s8, 128  ;;  %p1543_p12 = scmp.lt.s32.totalorder %s21_s8, %s21_s8 }
  0x1d   :  { %p1539_p11 = scmp.ne.s32.totalorder %s21_s8, %s1538_s1  ;;  %p1544_p13 = scmp.lt.s32.totalorder %s1538_s1, %s1538_s1 }
  0x1f   :  { %p1545_p0 = por %p1544_p13, %p1543_p12 }
  0x21   :  { %p1546_p1 = pnand %p1545_p0, %p1539_p11 }
  0x23   :  { %1549 = shalt.err (!%p1546_p1)
}
  0x24   :  { %23 = dma.hbm_to_vmem [thread:$0]  %s1787_s0, 128, %s21_s8, [#allocation3]  }
  0x25   :  { %s1550_s22 = scalar_lea.hbm %s1789_s2, 256 }
  0x26   :  { %p1551_p2 = scmp.ne.s32.totalorder %s1789_s2, %s1550_s22  ;;  %p1554_p3 = scmp.lt.u32.totalorder %s1550_s22, %s1789_s2 }
  0x28   :  { %p1556_p4 = pnand %p1554_p3, %p1551_p2 }
  0x2a   :  { %1559 = shalt.err (!%p1556_p4)
}
  0x2b   :  { %s1560_s27 = scalar_lea.vmem %s43_s10, 256  ;;  %p1565_p6 = scmp.lt.s32.totalorder %s43_s10, %s43_s10 }
  0x2c   :  { %p1561_p5 = scmp.ne.s32.totalorder %s43_s10, %s1560_s27  ;;  %p1566_p7 = scmp.lt.s32.totalorder %s1560_s27, %s1560_s27 }
  0x2e   :  { %p1567_p8 = por %p1566_p7, %p1565_p6 }
  0x30   :  { %p1568_p9 = pnand %p1567_p8, %p1561_p5 }
  0x32   :  { %1571 = shalt.err (!%p1568_p9)
}
  0x33   :  { %45 = dma.hbm_to_vmem [thread:$0]  %s1789_s2, 256, %s43_s10, [#allocation6]  }
  0x34   :  { %s1629_s29 = smov [#allocation8]   ;;  %s1572_s8 = scalar_lea.hbm %s1790_s3, 2048 }
  0x35   :  { %s52_s30 = sshll.u32 %s1629_s29, 4  ;;  %p1573_p10 = scmp.ne.s32.totalorder %s1790_s3, %s1572_s8  ;;  %s53_s30 = int_to_ptr.vmem [resolvable:$true] %s52_s30 }
  0x36   :  { %p1576_p11 = scmp.lt.u32.totalorder %s1572_s8, %s1790_s3 }
  0x38   :  { %p1578_p12 = pnand %p1576_p11, %p1573_p10 }
  0x3a   :  { %1581 = shalt.err (!%p1578_p12)
}
  0x3b   :  { %s1582_s14 = scalar_lea.vmem %s53_s30, 2048  ;;  %p1587_p0 = scmp.lt.s32.totalorder %s53_s30, %s53_s30 }
  0x3c   :  { %p1583_p13 = scmp.ne.s32.totalorder %s53_s30, %s1582_s14  ;;  %p1588_p1 = scmp.lt.s32.totalorder %s1582_s14, %s1582_s14 }
  0x3e   :  { %p1589_p2 = por %p1588_p1, %p1587_p0 }
  0x40   :  { %p1590_p3 = pnand %p1589_p2, %p1583_p13 }
  0x42   :  { %1593 = shalt.err (!%p1590_p3)
}
  0x43   :  { %55 = dma.hbm_to_vmem [thread:$0]  %s1790_s3, 2048, %s53_s30, [#allocation9]  }
  0x44   :  { %1616 = dma.done.wait [#allocation3], 128  }
  0x45   :  { %1617 = vsyncadd [#allocation3], 4294967168 }
  0x46   :  { %1618 = dma.done.wait [#allocation6], 8448  }
  0x47   :  { %1619 = vsyncadd [#allocation6], 4294958848 }
  0x48   :  { %1620 = dma.done.wait [#allocation9], 2048  }
  0x49   :  { %1621 = vsyncadd [#allocation9], 4294965248  ;;  %v1630_v0 = vmov 0.0   ;;  %v72_v1 = vld [vmem:[#allocation5 + $0x8] sm:$0xff]  ;;  %v71_v3 = vld [vmem:[#allocation5] sm:$0xff]  ;;  %vm219_vm0 = vcmask 261120  }
  0x4a   :  { %287 = vmatprep.mubr.f32.mxu1 %v1630_v0  ;;  %571 = vmatprep.mubr.f32.mxu0 %v1630_v0  ;;  %v88_v2 = vld [vmem:[#allocation5 + $0x88] sm:$0xff]  ;;  %v87_v5 = vld [vmem:[#allocation5 + $0x80] sm:$0xff]  ;;  %v74_v12 = vld [vmem:[#allocation5 + $0x18] sm:$0xff]  ;;  %s1631_s16 = smov [#allocation10]   ;;  %vm1391_vm1 = vcmask 64512  }
  0x4b   :  { %v1419_v4 = vpack.c.bf16 %v88_v2, %v72_v1  ;;  %v104_v6 = vld [vmem:[#allocation5 + $0x108] sm:$0xff]  ;;  %v1421_v8 = vpack.c.bf16 %v87_v5, %v71_v3  ;;  %v103_v10 = vld [vmem:[#allocation5 + $0x100] sm:$0xff]  ;;  %v90_v13 = vld [vmem:[#allocation5 + $0x98] sm:$0xff]  ;;  %s1399_s17 = sshll.u32 %s1631_s16, 4  ;;  %s1400_s17 = int_to_ptr.vmem [resolvable:$true] %s1399_s17 }
  0x4c   :  { %v120_v7 = vld [vmem:[#allocation5 + $0x188] sm:$0xff]  ;;  %v119_v11 = vld [vmem:[#allocation5 + $0x180] sm:$0xff]  ;;  %v1427_v15 = vpack.c.bf16 %v90_v13, %v74_v12  ;;  %v73_v16 = vld [vmem:[#allocation5 + $0x10] sm:$0xff]  ;;  %s1594_s1 = scalar_lea.vmem %s1400_s17, 128  ;;  %p1599_p5 = scmp.lt.s32.totalorder %s1400_s17, %s1400_s17 }
  0x4d   :  { %v1423_v9 = vpack.c.bf16 %v120_v7, %v104_v6  ;;  %1420 = vmatprep.subr.bf16.mxu1 %v1419_v4  ;;  %v1425_v14 = vpack.c.bf16 %v119_v11, %v103_v10  ;;  %v89_v17 = vld [vmem:[#allocation5 + $0x90] sm:$0xff]  ;;  %v106_v18 = vld [vmem:[#allocation5 + $0x118] sm:$0xff]  ;;  %v76_v25 = vld [vmem:[#allocation5 + $0x28] sm:$0xff]  ;;  %p1595_p4 = scmp.ne.s32.totalorder %s1400_s17, %s1594_s1  ;;  %p1600_p6 = scmp.lt.s32.totalorder %s1594_s1, %s1594_s1 }
  0x4e   :  { %1422 = vmatpush1.bf16.msra.mxu1 %v1421_v8  ;;  %v122_v19 = vld [vmem:[#allocation5 + $0x198] sm:$0xff]  ;;  %v1429_v21 = vpack.c.bf16 %v89_v17, %v73_v16  ;;  %v105_v23 = vld [vmem:[#allocation5 + $0x110] sm:$0xff]  ;;  %v92_v26 = vld [vmem:[#allocation5 + $0xa8] sm:$0xff] }
  0x4f   :  { %1424 = vmatprep.subr.bf16.mxu1 %v1423_v9  ;;  %v1712_v20 = vld [vmem:[#allocation2] sm:$0xff]  ;;  %v1431_v22 = vpack.c.bf16 %v122_v19, %v106_v18  ;;  %v121_v24 = vld [vmem:[#allocation5 + $0x190] sm:$0xff]  ;;  %v75_v27 = vld [vmem:[#allocation5 + $0x20] sm:$0xff]  ;;  %v1435_v36 = vpack.c.bf16 %v92_v26, %v76_v25  ;;  %p1601_p7 = por %p1600_p6, %p1599_p5 }
  0x50   :  { %v80_v28 = vld [vmem:[#allocation5 + $0x48] sm:$0xff]  ;;  %v79_v30 = vld [vmem:[#allocation5 + $0x40] sm:$0xff]  ;;  %v1433_v31 = vpack.c.bf16 %v121_v24, %v105_v23  ;;  %v78_v55 = vld [vmem:[#allocation5 + $0x38] sm:$0xff] }
  0x51   :  { %v96_v29 = vld [vmem:[#allocation5 + $0xc8] sm:$0xff]  ;;  %v95_v33 = vld [vmem:[#allocation5 + $0xc0] sm:$0xff]  ;;  %v94_v56 = vld [vmem:[#allocation5 + $0xb8] sm:$0xff]  ;;  %p1602_p8 = pnand %p1601_p7, %p1595_p4 }
  0x52   :  { %1426 = vmatpush1.bf16.msra.mxu1 %v1425_v14  ;;  %v1451_v32 = vpack.c.bf16 %v96_v29, %v80_v28  ;;  %v112_v34 = vld [vmem:[#allocation5 + $0x148] sm:$0xff]  ;;  %v91_v37 = vld [vmem:[#allocation5 + $0xa0] sm:$0xff]  ;;  %v1453_v38 = vpack.c.bf16 %v95_v33, %v79_v30  ;;  %v1443_v63 = vpack.c.bf16 %v94_v56, %v78_v55  ;;  %v77_v1 = vld [vmem:[#allocation5 + $0x30] sm:$0xff] }
  0x53   :  { %1428 = vmatprep.subr.bf16.mxu1 %v1427_v15  ;;  %v128_v35 = vld [vmem:[#allocation5 + $0x1c8] sm:$0xff]  ;;  %v111_v40 = vld [vmem:[#allocation5 + $0x140] sm:$0xff]  ;;  %v1437_v46 = vpack.c.bf16 %v91_v37, %v75_v27  ;;  %v93_v2 = vld [vmem:[#allocation5 + $0xb0] sm:$0xff] }
  0x54   :  { %v1455_v39 = vpack.c.bf16 %v128_v35, %v112_v34  ;;  %v127_v41 = vld [vmem:[#allocation5 + $0x1c0] sm:$0xff]  ;;  %v108_v42 = vld [vmem:[#allocation5 + $0x128] sm:$0xff]  ;;  %1452 = vmatprep.subr.bf16.mxu0 %v1451_v32  ;;  %v110_v3 = vld [vmem:[#allocation5 + $0x138] sm:$0xff]  ;;  %v1445_v6 = vpack.c.bf16 %v93_v2, %v77_v1 }
  0x55   :  { %1410 = vmatmul.mubr.msk.f32.vlgmr.msra.gmra.mrb[0].mxu1 %vm219_vm0, %v1712_v20  ;;  %v124_v43 = vld [vmem:[#allocation5 + $0x1a8] sm:$0xff]  ;;  %v107_v44 = vld [vmem:[#allocation5 + $0x120] sm:$0xff]  ;;  %1454 = vmatpush1.bf16.msra.mxu0 %v1453_v38  ;;  %v1457_v45 = vpack.c.bf16 %v127_v41, %v111_v40  ;;  %v126_v4 = vld [vmem:[#allocation5 + $0x1b8] sm:$0xff] }
  0x56   :  { %1430 = vmatpush1.bf16.msra.mxu1 %v1429_v21  ;;  %358 = vmatprep.mubr.f32.mxu1 %v1630_v0  ;;  %v123_v47 = vld [vmem:[#allocation5 + $0x1a0] sm:$0xff]  ;;  %v84_v48 = vld [vmem:[#allocation5 + $0x68] sm:$0xff]  ;;  %v1439_v50 = vpack.c.bf16 %v124_v43, %v108_v42  ;;  %v1447_v7 = vpack.c.bf16 %v126_v4, %v110_v3  ;;  %v109_v8 = vld [vmem:[#allocation5 + $0x130] sm:$0xff] }
  0x57   :  { %1432 = vmatprep.subr.bf16.mxu1 %v1431_v22  ;;  %1456 = vmatprep.subr.bf16.mxu0 %v1455_v39  ;;  %v100_v49 = vld [vmem:[#allocation5 + $0xe8] sm:$0xff]  ;;  %v83_v52 = vld [vmem:[#allocation5 + $0x60] sm:$0xff]  ;;  %v1441_v59 = vpack.c.bf16 %v123_v47, %v107_v44  ;;  %v125_v9 = vld [vmem:[#allocation5 + $0x1b0] sm:$0xff]  ;;  %v139_v39 = vlaneseq }
  0x58   :  { %v1467_v51 = vpack.c.bf16 %v100_v49, %v84_v48  ;;  %v99_v53 = vld [vmem:[#allocation5 + $0xe0] sm:$0xff]  ;;  %v116_v54 = vld [vmem:[#allocation5 + $0x168] sm:$0xff]  ;;  %v82_v10 = vld [vmem:[#allocation5 + $0x58] sm:$0xff]  ;;  %v1449_v12 = vpack.c.bf16 %v125_v9, %v109_v8 }
  0x59   :  { %v132_v57 = vld [vmem:[#allocation5 + $0x1e8] sm:$0xff]  ;;  %1458 = vmatpush1.bf16.msra.mxu0 %v1457_v45  ;;  %v1469_v58 = vpack.c.bf16 %v99_v53, %v83_v52  ;;  %v115_v61 = vld [vmem:[#allocation5 + $0x160] sm:$0xff]  ;;  %v98_v11 = vld [vmem:[#allocation5 + $0xd8] sm:$0xff]  ;;  %v1736_v40 = vshrl.u32 %v139_v39, 7 }
  0x5a   :  { %1434 = vmatpush1.bf16.msra.mxu1 %v1433_v31  ;;  %v1471_v60 = vpack.c.bf16 %v132_v57, %v116_v54  ;;  %v131_v62 = vld [vmem:[#allocation5 + $0x1e0] sm:$0xff]  ;;  %1468 = vmatprep.subr.bf16.mxu0 %v1467_v51  ;;  %v1459_v13 = vpack.c.bf16 %v98_v11, %v82_v10  ;;  %v81_v14 = vld [vmem:[#allocation5 + $0x50] sm:$0xff]  ;;  %v114_v16 = vld [vmem:[#allocation5 + $0x158] sm:$0xff] }
  0x5b   :  { %1436 = vmatprep.subr.bf16.mxu1 %v1435_v36  ;;  %v1473_v5 = vpack.c.bf16 %v131_v62, %v115_v61  ;;  %v97_v15 = vld [vmem:[#allocation5 + $0xd0] sm:$0xff]  ;;  %v130_v17 = vld [vmem:[#allocation5 + $0x1d8] sm:$0xff]  ;;  %v810_v38 = vld [vmem:[#allocation8 + $0x18] sm:$0xff]  ;;  %v141_v41 = vsub.s32 0, %v1736_v40  ;;  %v145_v43 = vsub.s32 1, %v1736_v40  ;;  %v149_v47 = vsub.s32 2, %v1736_v40 }
  0x5c   :  { %1414 = vmatmul.mubr.msk.f32.vlgmr.msra.gmra.mrb[0].mxu0 %vm219_vm0, %v1712_v20  ;;  %v1461_v18 = vpack.c.bf16 %v97_v15, %v81_v14  ;;  %v1463_v19 = vpack.c.bf16 %v130_v17, %v114_v16  ;;  %v113_v21 = vld [vmem:[#allocation5 + $0x150] sm:$0xff]  ;;  %v86_v23 = vld [vmem:[#allocation5 + $0x78] sm:$0xff]  ;;  %v135_v42 = vld [vmem:[#allocation7] sm:$0xff]  ;;  %v153_v49 = vsub.s32 3, %v1736_v40  ;;  %v161_v61 = vsub.s32 5, %v1736_v40 }
  0x5d   :  { %1411 = vmatmul.mubr.msk.f32.vlgmr.msra.gmra.mrb[2].mxu1 %vm219_vm0, %v1712_v20  ;;  %1470 = vmatpush1.bf16.msra.mxu0 %v1469_v58  ;;  %v129_v22 = vld [vmem:[#allocation5 + $0x1d0] sm:$0xff]  ;;  %v102_v24 = vld [vmem:[#allocation5 + $0xf8] sm:$0xff]  ;;  %v146_v44 = vrot.slane %v135_v42, %v145_v43  ;;  %v809_v52 = vld [vmem:[#allocation8 + $0x10] sm:$0xff]  ;;  %v150_v53 = vrot.slane %v135_v42, %v149_v47  ;;  %v165_v10 = vsub.s32 6, %v1736_v40 }
  0x5e   :  { %1438 = vmatpush1.bf16.msra.mxu1 %v1437_v46  ;;  %429 = vmatprep.mubr.f32.mxu1 %v1630_v0  ;;  %v1465_v25 = vpack.c.bf16 %v129_v22, %v113_v21  ;;  %v1475_v26 = vpack.c.bf16 %v102_v24, %v86_v23  ;;  %v85_v27 = vld [vmem:[#allocation5 + $0x70] sm:$0xff]  ;;  %v118_v29 = vld [vmem:[#allocation5 + $0x178] sm:$0xff]  ;;  %v154_v54 = vrot.slane %v135_v42, %v153_v49  ;;  %v1751_v11 = vld [vmem:[#allocation7 + $0x8] sm:$0xff] }
  0x5f   :  { %1440 = vmatprep.subr.bf16.mxu1 %v1439_v50  ;;  %713 = vmatprep.mubr.f32.mxu0 %v1630_v0  ;;  %v101_v28 = vld [vmem:[#allocation5 + $0xf0] sm:$0xff]  ;;  %v134_v30 = vld [vmem:[#allocation5 + $0x1f8] sm:$0xff]  ;;  %v178_v16 = vrot.slane %v1751_v11, %v145_v43  ;;  %v166_v21 = vrot.slane %v135_v42, %v165_v10  ;;  %v194_v43 = vrot.slane %v1751_v11, %v161_v61 }
  0x60   :  { %1472 = vmatprep.subr.bf16.mxu0 %v1471_v60  ;;  %v1477_v31 = vpack.c.bf16 %v101_v28, %v85_v27  ;;  %v1479_v32 = vpack.c.bf16 %v134_v30, %v118_v29  ;;  %v117_v33 = vld [vmem:[#allocation5 + $0x170] sm:$0xff]  ;;  %v808_v36 = vld [vmem:[#allocation8 + $0x8] sm:$0xff] }
  0x61   :  { %1474 = vmatpush1.bf16.msra.mxu0 %v1473_v5  ;;  %v133_v34 = vld [vmem:[#allocation5 + $0x1f0] sm:$0xff]  ;;  %v812_v55 = vld [vmem:[#allocation8 + $0x28] sm:$0xff]  ;;  %v162_v5 = vrot.slane %v135_v42, %v161_v61  ;;  %v821_v61 = vld [vmem:[#allocation8 + $0x70] sm:$0xff] }
  0x62   :  { %1442 = vmatpush1.bf16.msra.mxu1 %v1441_v59  ;;  %v1481_v35 = vpack.c.bf16 %v133_v34, %v117_v33  ;;  %830 = vmatprep.subr.mxu0 %v808_v36  ;;  %v807_v37 = vld [vmem:[#allocation8] sm:$0xff]  ;;  %v157_v59 = vsub.s32 4, %v1736_v40  ;;  %v816_v23 = vld [vmem:[#allocation8 + $0x48] sm:$0xff]  ;;  %v818_v34 = vld [vmem:[#allocation8 + $0x58] sm:$0xff] }
  0x63   :  { %1444 = vmatprep.subr.bf16.mxu1 %v1443_v63  ;;  %v811_v3 = vld [vmem:[#allocation8 + $0x20] sm:$0xff] }
  0x64   :  { %1416 = vmatmul.mubr.msk.f32.vlgmr.msra.gmra.mrb[2].mxu0 %vm219_vm0, %v1712_v20  ;;  %v158_v4 = vrot.slane %v135_v42, %v157_v59  ;;  %v815_v33 = vld [vmem:[#allocation8 + $0x40] sm:$0xff] }
  0x65   :  { %1412 = vmatmul.mubr.msk.f32.vlgmr.msra.gmra.mrb[4].mxu1 %vm219_vm0, %v1712_v20 }
  0x66   :  { %1446 = vmatpush1.bf16.msra.mxu1 %v1445_v6  ;;  %500 = vmatprep.mubr.f32.mxu1 %v1630_v0  ;;  %v814_v6 = vld [vmem:[#allocation8 + $0x38] sm:$0xff] }
  0x67   :  { %1448 = vmatprep.subr.bf16.mxu1 %v1447_v7 }
  0x6a   :  { %1450 = vmatpush1.bf16.msra.mxu1 %v1449_v12  ;;  %831 = vmatpush1.xpose.msra.mxu0 %v807_v37 }
  0x6b   :  { %1460 = vmatprep.subr.bf16.mxu1 %v1459_v13  ;;  %900 = vmatprep.subr.mxu0 %v810_v38  ;;  %v169_v13 = vsub.s32 7, %v1736_v40 }
  0x6d   :  { %1413 = vmatmul.mubr.msk.f32.vlgmr.msra.gmra.mrb[6].mxu1 %vm219_vm0, %v1712_v20  ;;  %v170_v22 = vrot.slane %v135_v42, %v169_v13 }
  0x6e   :  { %1462 = vmatpush1.bf16.msra.mxu1 %v1461_v18  ;;  %642 = vmatprep.mubr.f32.mxu1 %v1630_v0 }
  0x6f   :  { %1464 = vmatprep.subr.bf16.mxu1 %v1463_v19  ;;  %v813_v19 = vld [vmem:[#allocation8 + $0x30] sm:$0xff] }
  0x72   :  { %1466 = vmatpush1.bf16.msra.mxu1 %v1465_v25 }
  0x73   :  { %1476 = vmatprep.subr.bf16.mxu1 %v1475_v26 }
  0x75   :  { %1415 = vmatmul.mubr.msk.f32.vlgmr.msra.gmra.mrb[8].mxu1 %vm219_vm0, %v1712_v20 }
  0x76   :  { %1478 = vmatpush1.bf16.msra.mxu1 %v1477_v31  ;;  %784 = vmatprep.mubr.f32.mxu1 %v1630_v0  ;;  %v142_v0 = vrot.slane %v135_v42, %v141_v41 }
  0x77   :  { %1480 = vmatprep.subr.bf16.mxu1 %v1479_v32  ;;  %v174_v32 = vrot.slane %v1751_v11, %v141_v41  ;;  %v182_v41 = vrot.slane %v1751_v11, %v149_v47  ;;  %v822_v47 = vld [vmem:[#allocation8 + $0x78] sm:$0xff] }
  0x7a   :  { %1482 = vmatpush1.bf16.msra.mxu1 %v1481_v35  ;;  %v186_v35 = vrot.slane %v1751_v11, %v153_v49 }
  0x7d   :  { %1417 = vmatmul.mubr.msk.f32.vlgmr.msra.gmra.mrb[10].mxu1 %vm219_vm0, %v1712_v20 }
 0x128   :  { %v289_v45 = vpop.f32.mrb[0].mxu1 }
 0x129   :  { %v290_v20 = vadd.f32 %v289_v45, %v142_v0  ;;  %v291_v46 = vpop.f32.mrb[1].mxu1  ;;  %v820_v45 = vld [vmem:[#allocation8 + $0x68] sm:$0xff] }
 0x12a   :  { %v292_v48 = vadd.f32 %v291_v46, %v146_v44  ;;  %v817_v44 = vld [vmem:[#allocation8 + $0x50] sm:$0xff] }
 0x12b   :  { %v791_v51 = vmax.f32 %v290_v20, 0.0 }
 0x12c   :  { %v792_v50 = vmax.f32 %v292_v48, 0.0 }
 0x12e   :  { %894 = vmatprep.mubr.f32.mxu0 %v792_v50 }
 0x12f   :  { %895 = vmatmul.mubr.f32.vlgmr.msra.gmra.mrb[4].mxu0 %v791_v51  ;;  %v573_v62 = vpop.f32.mrb[0].mxu0  ;;  %v202_v51 = vrot.slane %v1751_v11, %v169_v13 }
 0x130   :  { %901 = vmatpush1.xpose.msra.mxu0 %v809_v52  ;;  %v360_v56 = vpop.f32.mrb[2].mxu1  ;;  %v575_v1 = vpop.f32.mrb[1].mxu0  ;;  %v574_v37 = vadd.f32 %v573_v62, %v174_v32 }
 0x131   :  { %v361_v57 = vadd.f32 %v360_v56, %v150_v53  ;;  %v362_v58 = vpop.f32.mrb[3].mxu1  ;;  %970 = vmatprep.subr.mxu0 %v812_v55  ;;  %v576_v25 = vadd.f32 %v575_v1, %v178_v16  ;;  %v190_v53 = vrot.slane %v1751_v11, %v157_v59 }
 0x132   :  { %v363_v60 = vadd.f32 %v362_v58, %v154_v54  ;;  %v799_v0 = vmax.f32 %v574_v37, 0.0  ;;  %v819_v54 = vld [vmem:[#allocation8 + $0x60] sm:$0xff] }
 0x133   :  { %v793_v2 = vmax.f32 %v361_v57, 0.0  ;;  %v800_v30 = vmax.f32 %v576_v25, 0.0 }
 0x134   :  { %v794_v63 = vmax.f32 %v363_v60, 0.0  ;;  %v198_v60 = vrot.slane %v1751_v11, %v165_v10 }
 0x136   :  { %964 = vmatprep.mubr.f32.mxu0 %v794_v63  ;;  %v1418_v63 = vld [vmem:[%s1791_s4] ss:$0 sm:$0xff] }
 0x137   :  { %965 = vmatmul.mubr.f32.vlgmr.msra.gmra.mrb[4].mxu0 %v793_v2  ;;  %v715_v14 = vpop.f32.mrb[2].mxu0 }
 0x138   :  { %971 = vmatpush1.xpose.msra.mxu0 %v811_v3  ;;  %v431_v7 = vpop.f32.mrb[4].mxu1  ;;  %v717_v17 = vpop.f32.mrb[3].mxu0  ;;  %v716_v56 = vadd.f32 %v715_v14, %v190_v53 }
 0x139   :  { %v432_v8 = vadd.f32 %v431_v7, %v158_v4  ;;  %v433_v9 = vpop.f32.mrb[5].mxu1  ;;  %1040 = vmatprep.subr.mxu0 %v814_v6  ;;  %v718_v20 = vadd.f32 %v717_v17, %v194_v43 }
 0x13a   :  { %v434_v12 = vadd.f32 %v433_v9, %v162_v5  ;;  %v803_v58 = vmax.f32 %v716_v56, 0.0 }
 0x13b   :  { %v795_v18 = vmax.f32 %v432_v8, 0.0  ;;  %v804_v50 = vmax.f32 %v718_v20, 0.0 }
 0x13c   :  { %v796_v15 = vmax.f32 %v434_v12, 0.0 }
 0x13e   :  { %1034 = vmatprep.mubr.f32.mxu0 %v796_v15 }
 0x13f   :  { %1035 = vmatmul.mubr.f32.vlgmr.msra.gmra.mrb[4].mxu0 %v795_v18 }
 0x140   :  { %1041 = vmatpush1.xpose.msra.mxu0 %v813_v19  ;;  %v502_v24 = vpop.f32.mrb[6].mxu1 }
 0x141   :  { %v503_v26 = vadd.f32 %v502_v24, %v166_v21  ;;  %v504_v27 = vpop.f32.mrb[7].mxu1  ;;  %1110 = vmatprep.subr.mxu0 %v816_v23 }
 0x142   :  { %v505_v28 = vadd.f32 %v504_v27, %v170_v22 }
 0x143   :  { %v797_v31 = vmax.f32 %v503_v26, 0.0 }
 0x144   :  { %v798_v29 = vmax.f32 %v505_v28, 0.0 }
 0x146   :  { %1104 = vmatprep.mubr.f32.mxu0 %v798_v29 }
 0x147   :  { %1105 = vmatmul.mubr.f32.vlgmr.msra.gmra.mrb[4].mxu0 %v797_v31 }
 0x148   :  { %1111 = vmatpush1.xpose.msra.mxu0 %v815_v33  ;;  %1174 = vmatprep.mubr.f32.mxu0 %v800_v30  ;;  %v644_v36 = vpop.f32.mrb[8].mxu1 }
 0x149   :  { %1180 = vmatprep.subr.mxu0 %v818_v34  ;;  %v646_v38 = vpop.f32.mrb[9].mxu1  ;;  %v645_v48 = vadd.f32 %v644_v36, %v182_v41 }
 0x14a   :  { %v647_v39 = vadd.f32 %v646_v38, %v186_v35 }
 0x14b   :  { %v801_v52 = vmax.f32 %v645_v48, 0.0 }
 0x14c   :  { %v802_v42 = vmax.f32 %v647_v39, 0.0 }
 0x14f   :  { %1175 = vmatmul.mubr.f32.vlgmr.msra.gmra.mrb[4].mxu0 %v799_v0 }
 0x150   :  { %1181 = vmatpush1.xpose.msra.mxu0 %v817_v44  ;;  %1244 = vmatprep.mubr.f32.mxu0 %v802_v42  ;;  %v786_v46 = vpop.f32.mrb[10].mxu1 }
 0x151   :  { %1250 = vmatprep.subr.mxu0 %v820_v45  ;;  %v788_v49 = vpop.f32.mrb[11].mxu1  ;;  %v787_v62 = vadd.f32 %v786_v46, %v198_v60 }
 0x152   :  { %v789_v55 = vadd.f32 %v788_v49, %v202_v51 }
 0x153   :  { %v805_v59 = vmax.f32 %v787_v62, 0.0 }
 0x154   :  { %v806_v57 = vmax.f32 %v789_v55, 0.0 }
 0x157   :  { %1245 = vmatmul.mubr.f32.vlgmr.msra.gmra.mrb[4].mxu0 %v801_v52 }
 0x158   :  { %1251 = vmatpush1.xpose.msra.mxu0 %v819_v54  ;;  %1314 = vmatprep.mubr.f32.mxu0 %v804_v50 }
 0x159   :  { %1320 = vmatprep.subr.mxu0 %v822_v47 }
 0x15f   :  { %1315 = vmatmul.mubr.f32.vlgmr.msra.gmra.mrb[4].mxu0 %v803_v58 }
 0x160   :  { %1321 = vmatpush1.xpose.msra.mxu0 %v821_v61  ;;  %1384 = vmatprep.mubr.f32.mxu0 %v806_v57 }
 0x167   :  { %1385 = vmatmul.mubr.f32.vlgmr.msra.gmra.mrb[4].mxu0 %v805_v59 }
 0x23a   :  { %v1386_v1 = vpop.f32.mrb[4].mxu0 }
 0x23b   :  { %v1483_v2 = vadd.f32 %v1418_v63, %v1386_v1  ;;  %v1388_v3 = vpop.f32.mrb[5].mxu0 }
 0x23d   :  { %v1390_v40 = vmul.f32 0.022097087, %v1483_v2 }
 0x23f   :  { %1392 = vst.msk [vmem:[#allocation10] sm:$0xff] %vm1391_vm1, %v1390_v40 }
 0x240   :  { %1605 = shalt.err (!%p1602_p8)
}
 0x241   :  { %s1606_s4 = scalar_lea.hbm %s1792_s5, 128 }
 0x242   :  { %p1607_p9 = scmp.ne.s32.totalorder %s1792_s5, %s1606_s4  ;;  %p1610_p10 = scmp.lt.u32.totalorder %s1606_s4, %s1792_s5 }
 0x244   :  { %p1612_p11 = pnand %p1610_p10, %p1607_p9 }
 0x246   :  { %1615 = shalt.err (!%p1612_p11)
}
 0x247   :  { %1402 = dma.vmem_to_hbm [thread:$0]  %s1400_s17, 128, %s1792_s5, [#allocation4]  }
 0x248   :  { %1622 = dma.done.wait [#allocation4], 128  }
 0x249   :  { %1623 = vsyncadd [#allocation4], 4294967168 }
 0x24a   :  { %1406 = vsyncpa [#allocation3], 1 }
 0x24b   :  { %1407 = vsyncpa [#allocation6], 1 }
 0x24c   :  { %1408 = vsyncpa [#allocation9], 1 }
 0x24d   :  { %1409 = vsyncpa [#allocation4], 1 }

</bundles_post_ra>
